<compile_context>
chip_gen: v5e
topology: v5e:2x2
jax: 0.10.0
libtpu: 0.0.40
codegen_flags: <defaults>
</compile_context>

<pallas_src>
import functools

import jax
import jax.numpy as jnp
from jax.experimental import pallas as pl
from jax.experimental.pallas import tpu as pltpu


def _round_up(n, m):
    return ((n + m - 1) // m) * m


def _cdiv(a, b):
    return (a + b - 1) // b


def _default_vmem_limit_bytes():
    # v7x: 64 MiB VMEM/TC -> 32 MiB cap; v5e/v6e: 128 MiB -> 64 MiB cap.
    try:
        cap = int(pltpu.get_tpu_info().vmem_capacity_bytes)
        return min(cap // 2, 64 * 1024 * 1024)
    except Exception:
        return 32 * 1024 * 1024


_VMEM_LIMIT_BYTES = _default_vmem_limit_bytes()


def mlp_kernel(x_ref, w1_ref, b1_ref, w2_ref, b2_ref, w3_ref, b3_ref, o_ref):
    # x / weights are bf16 (cast once at prep / wrapper); all elementwise math is f32.
    x = x_ref[...]

    # Layer 1: Linear + ReLU (+ Dropout == identity in eval)
    h1 = jnp.dot(x, w1_ref[...], preferred_element_type=jnp.float32) + b1_ref[...]
    h1 = jnp.maximum(h1, 0.0).astype(w2_ref.dtype)

    # Layer 2: Linear + ReLU (+ Dropout == identity in eval)
    h2 = jnp.dot(h1, w2_ref[...], preferred_element_type=jnp.float32) + b2_ref[...]
    h2 = jnp.maximum(h2, 0.0).astype(w3_ref.dtype)

    # Output layer: Linear + Softmax over the lane-dense, padded class axis.
    # Padded columns have zero weights and -1e30 bias -> exp(pad - max) == 0 exactly,
    # so the softmax over the padded width equals softmax over the real classes.
    logits = jnp.dot(h2, w3_ref[...], preferred_element_type=jnp.float32) + b3_ref[...]
    m = jnp.max(logits, axis=-1, keepdims=True)
    e = jnp.exp(logits - m)
    denom = jnp.sum(e, axis=-1, keepdims=True)
    # Exact f32 normalization (approx reciprocal broke the row-sum invariant).
    o_ref[...] = (e / denom).astype(o_ref.dtype)


def prepare_params(params, *, compute_dtype=jnp.bfloat16):
    """One-time weight prep (call once, reuse every forward):
       - pad hidden dims and the class dim to multiples of 128 (exact: zero weights,
         zero hidden biases, -1e30 class bias on padded lanes),
       - cast matmul weights to bf16 for native-rate MXU; biases stay f32."""
    w1, b1 = params["w1"], params["b1"]
    w2, b2 = params["w2"], params["b2"]
    w3, b3 = params["w3"], params["b3"]

    h1p = _round_up(w1.shape[1], 128)
    h2p = _round_up(w2.shape[1], 128)
    outp = _round_up(w3.shape[1], 128)

    w1 = jnp.pad(w1, ((0, 0), (0, h1p - w1.shape[1])))
    b1 = jnp.pad(b1, ((0, 0), (0, h1p - b1.shape[1])))
    w2 = jnp.pad(w2, ((0, h1p - w2.shape[0]), (0, h2p - w2.shape[1])))
    b2 = jnp.pad(b2, ((0, 0), (0, h2p - b2.shape[1])))
    w3 = jnp.pad(w3, ((0, h2p - w3.shape[0]), (0, outp - w3.shape[1])))
    b3 = jnp.pad(b3, ((0, 0), (0, outp - b3.shape[1])), constant_values=-1e30)

    # NOTE: the input (contraction) dim is NOT padded -- it equals the full array
    # dim in the BlockSpec (legal layout) and padding it would add a per-call x pad.
    return {
        "w1": w1.astype(compute_dtype), "b1": b1.astype(jnp.float32),
        "w2": w2.astype(compute_dtype), "b2": b2.astype(jnp.float32),
        "w3": w3.astype(compute_dtype), "b3": b3.astype(jnp.float32),
    }


@functools.partial(jax.jit, static_argnames=("out_dim", "block_rows", "out_dtype"))
def simple_mlp_forward(x, params, out_dim, block_rows=512, out_dtype=jnp.bfloat16):
    """x: (B, input_dim) float32. params: output of prepare_params()."""
    w1, b1 = params["w1"], params["b1"]
    w2, b2 = params["w2"], params["b2"]
    w3, b3 = params["w3"], params["b3"]

    B, in_dim = x.shape
    h1p, h2p, out_pad = w1.shape[1], w2.shape[1], w3.shape[1]

    # Balanced batch tiling: bounded padding (<= 7 rows/block) and >= 2 blocks
    # whenever B > 8 so the "parallel" batch axis can feed both v7x TensorCores.
    n_blocks = max(_cdiv(B, block_rows), 2 if B > 8 else 1)
    TB = _round_up(_cdiv(B, n_blocks), 8)
    Bp = TB * n_blocks

    x = x.astype(w1.dtype)                      # bf16 input stream (halves x HBM read)
    if Bp != B:
        x = jnp.pad(x, ((0, Bp - B), (0, 0)))

    vmem = pltpu.MemorySpace.VMEM
    # x / out tiles move with the grid index; weights/biases pin to block (0, 0)
    # so they are DMA'd once and stay VMEM-resident across the batch loop.
    x_spec = pl.BlockSpec((TB, in_dim), lambda i: (i, 0), memory_space=vmem)
    o_spec = pl.BlockSpec((TB, out_pad), lambda i: (i, 0), memory_space=vmem)
    const = lambda shape: pl.BlockSpec(shape, lambda i: (0, 0), memory_space=vmem)
    # TODO(synk): for production hidden sizes, single-buffer the constant weight
    # specs (pipeline_mode=pl.Buffered(1)) to halve their resident VMEM footprint.

    flops = 2 * Bp * (in_dim * h1p + h1p * h2p + h2p * out_pad)
    transcendentals = Bp * out_pad
    out_isz = jnp.dtype(out_dtype).itemsize
    bytes_accessed = (
        x.dtype.itemsize * Bp * in_dim
        + sum(int(a.size) * a.dtype.itemsize for a in (w1, b1, w2, b2, w3, b3))
        + out_isz * Bp * out_pad
    )

    out_padded = pl.pallas_call(
        mlp_kernel,
        out_shape=jax.ShapeDtypeStruct((Bp, out_pad), out_dtype),
        grid=(n_blocks,),
        in_specs=[
            x_spec,
            const(w1.shape), const(b1.shape),
            const(w2.shape), const(b2.shape),
            const(w3.shape), const(b3.shape),
        ],
        out_specs=o_spec,
        compiler_params=pltpu.CompilerParams(
            dimension_semantics=("parallel",),   # shard batch blocks across TCs on v7x
            vmem_limit_bytes=_VMEM_LIMIT_BYTES,  # 32 MiB on v7x, 64 MiB on v5e/v6e
        ),
        cost_estimate=pl.CostEstimate(
            flops=flops,
            transcendentals=transcendentals,
            bytes_accessed=bytes_accessed,
        ),
    )(x, w1, b1, w2, b2, w3, b3)

    # Slice away batch padding and padded class lanes outside the kernel.
    return out_padded[:B, :out_dim]


def init_params(key, input_dim, hidden_units, output_dim):
    """Deterministic init matching nn.Linear shapes (weights pre-transposed to (in, out))."""
    dims = [input_dim] + list(hidden_units) + [output_dim]
    params = {}
    keys = jax.random.split(key, 2 * (len(dims) - 1))
    for i in range(len(dims) - 1):
        fan_in, fan_out = dims[i], dims[i + 1]
        bound = 1.0 / jnp.sqrt(fan_in)
        w = jax.random.uniform(keys[2 * i], (fan_in, fan_out),
                               minval=-bound, maxval=bound, dtype=jnp.float32)
        b = jax.random.uniform(keys[2 * i + 1], (1, fan_out),
                               minval=-bound, maxval=bound, dtype=jnp.float32)
        params[f"w{i + 1}"] = w
        params[f"b{i + 1}"] = b
    return params


def _reference_forward(x, params):
    h1 = jnp.maximum(x @ params["w1"] + params["b1"], 0.0)
    h2 = jnp.maximum(h1 @ params["w2"] + params["b2"], 0.0)
    logits = h2 @ params["w3"] + params["b3"]
    return jax.nn.softmax(logits, axis=-1)


if __name__ == "__main__":
    key = jax.random.PRNGKey(0)
    k_x, k_p = jax.random.split(key)

    batch = 8
    input_dim = 32
    hidden_units = [64, 128]
    output_dim = 10

    x = jax.random.normal(k_x, (batch, input_dim), dtype=jnp.float32)
    raw_params = init_params(k_p, input_dim, hidden_units, output_dim)
    params = prepare_params(raw_params)          # one-time pad + bf16 cast

    ref = _reference_forward(x, raw_params)      # pure-f32 reference

    # ---- f32 writeback path (tight check) ----
    out = simple_mlp_forward(x, params, output_dim, out_dtype=jnp.float32)
    out = jax.block_until_ready(out)
    assert out.shape == (batch, output_dim)
    row_sums = jnp.sum(out, axis=1)
    assert bool(jnp.all(jnp.abs(row_sums - 1.0) < 1e-4)), row_sums
    assert bool(jnp.all(jnp.abs(out - ref) < 1e-2))        # bf16-MXU tolerance

    # ---- bf16 writeback path (HBM-lean default; looser tolerance from bf16 rounding) ----
    out_bf = simple_mlp_forward(x, params, output_dim, out_dtype=jnp.bfloat16)
    out_bf = jax.block_until_ready(out_bf).astype(jnp.float32)
    assert out_bf.shape == (batch, output_dim)
    row_sums_bf = jnp.sum(out_bf, axis=1)
    assert bool(jnp.all(jnp.abs(row_sums_bf - 1.0) < 1e-2)), row_sums_bf
    assert bool(jnp.all(jnp.abs(out_bf - ref) < 2e-2))

    print("KERNEL_OK")
</pallas_src>

<mosaic_0001>
module attributes {stable_mosaic.version = 11 : i64} {
  func.func @mlp_kernel(%arg0: i32, %arg1: memref<8x32xbf16, #tpu.memory_space<vmem>>, %arg2: memref<32x128xbf16, #tpu.memory_space<vmem>>, %arg3: memref<1x128xf32, #tpu.memory_space<vmem>>, %arg4: memref<128x128xbf16, #tpu.memory_space<vmem>>, %arg5: memref<1x128xf32, #tpu.memory_space<vmem>>, %arg6: memref<128x128xbf16, #tpu.memory_space<vmem>>, %arg7: memref<1x128xf32, #tpu.memory_space<vmem>>, %arg8: memref<8x128xf32, #tpu.memory_space<vmem>>) attributes {dimension_semantics = [#tpu.dimension_semantics<parallel>], iteration_bounds = array<i64: 1>, scalar_prefetch = 0 : i64, scratch_operands = 0 : i64, tpu.core_type = #tpu.core_type<tc>, window_params = [{transform_indices = @transform_0, window_bounds = array<i64: 8, 32>}, {pipeline_mode = #tpu.pipeline_mode<synchronous>, transform_indices = @transform_1, window_bounds = array<i64: 32, 128>}, {pipeline_mode = #tpu.pipeline_mode<synchronous>, transform_indices = @transform_2, window_bounds = array<i64: 1, 128>}, {pipeline_mode = #tpu.pipeline_mode<synchronous>, transform_indices = @transform_3, window_bounds = array<i64: 128, 128>}, {pipeline_mode = #tpu.pipeline_mode<synchronous>, transform_indices = @transform_4, window_bounds = array<i64: 1, 128>}, {pipeline_mode = #tpu.pipeline_mode<synchronous>, transform_indices = @transform_5, window_bounds = array<i64: 128, 128>}, {pipeline_mode = #tpu.pipeline_mode<synchronous>, transform_indices = @transform_6, window_bounds = array<i64: 1, 128>}, {transform_indices = @transform_7, window_bounds = array<i64: 8, 128>}]} {
    %c0 = arith.constant 0 : index
    %c0_0 = arith.constant 0 : index
    %0 = vector.load %arg1[%c0, %c0_0] : memref<8x32xbf16, #tpu.memory_space<vmem>>, vector<8x32xbf16>
    %c0_1 = arith.constant 0 : index
    %c0_2 = arith.constant 0 : index
    %1 = vector.load %arg2[%c0_1, %c0_2] : memref<32x128xbf16, #tpu.memory_space<vmem>>, vector<32x128xbf16>
    %cst = arith.constant dense<0.000000e+00> : vector<8x128xf32>
    %2 = tpu.matmul %0, %1, %cst {dimension_numbers = #tpu.dot_dimension_numbers<[1], [0], [0], [1], [0, 0, 1, 1], [], []>} : vector<8x32xbf16>, vector<32x128xbf16>, vector<8x128xf32> -> vector<8x128xf32>
    %c0_3 = arith.constant 0 : index
    %c0_4 = arith.constant 0 : index
    %3 = vector.load %arg3[%c0_3, %c0_4] : memref<1x128xf32, #tpu.memory_space<vmem>>, vector<1x128xf32>
    %4 = vector.broadcast %3 : vector<1x128xf32> to vector<8x128xf32>
    %5 = arith.addf %2, %4 : vector<8x128xf32>
    %cst_5 = arith.constant 0.000000e+00 : f32
    %6 = vector.broadcast %cst_5 : f32 to vector<8x128xf32>
    %7 = arith.maximumf %5, %6 : vector<8x128xf32>
    %8 = arith.truncf %7 : vector<8x128xf32> to vector<8x128xbf16>
    %c0_6 = arith.constant 0 : index
    %c0_7 = arith.constant 0 : index
    %9 = vector.load %arg4[%c0_6, %c0_7] : memref<128x128xbf16, #tpu.memory_space<vmem>>, vector<128x128xbf16>
    %cst_8 = arith.constant dense<0.000000e+00> : vector<8x128xf32>
    %10 = tpu.matmul %8, %9, %cst_8 {dimension_numbers = #tpu.dot_dimension_numbers<[1], [0], [0], [1], [0, 0, 1, 1], [], []>} : vector<8x128xbf16>, vector<128x128xbf16>, vector<8x128xf32> -> vector<8x128xf32>
    %c0_9 = arith.constant 0 : index
    %c0_10 = arith.constant 0 : index
    %11 = vector.load %arg5[%c0_9, %c0_10] : memref<1x128xf32, #tpu.memory_space<vmem>>, vector<1x128xf32>
    %12 = vector.broadcast %11 : vector<1x128xf32> to vector<8x128xf32>
    %13 = arith.addf %10, %12 : vector<8x128xf32>
    %cst_11 = arith.constant 0.000000e+00 : f32
    %14 = vector.broadcast %cst_11 : f32 to vector<8x128xf32>
    %15 = arith.maximumf %13, %14 : vector<8x128xf32>
    %16 = arith.truncf %15 : vector<8x128xf32> to vector<8x128xbf16>
    %c0_12 = arith.constant 0 : index
    %c0_13 = arith.constant 0 : index
    %17 = vector.load %arg6[%c0_12, %c0_13] : memref<128x128xbf16, #tpu.memory_space<vmem>>, vector<128x128xbf16>
    %cst_14 = arith.constant dense<0.000000e+00> : vector<8x128xf32>
    %18 = tpu.matmul %16, %17, %cst_14 {dimension_numbers = #tpu.dot_dimension_numbers<[1], [0], [0], [1], [0, 0, 1, 1], [], []>} : vector<8x128xbf16>, vector<128x128xbf16>, vector<8x128xf32> -> vector<8x128xf32>
    %c0_15 = arith.constant 0 : index
    %c0_16 = arith.constant 0 : index
    %19 = vector.load %arg7[%c0_15, %c0_16] : memref<1x128xf32, #tpu.memory_space<vmem>>, vector<1x128xf32>
    %20 = vector.broadcast %19 : vector<1x128xf32> to vector<8x128xf32>
    %21 = arith.addf %18, %20 : vector<8x128xf32>
    %cst_17 = arith.constant dense<0xFF800000> : vector<8xf32>
    %22 = vector.multi_reduction <maximumf>, %21, %cst_17 [1] : vector<8x128xf32> to vector<8xf32>
    %23 = vector.shape_cast %22 : vector<8xf32> to vector<8x1xf32>
    %24 = vector.broadcast %23 : vector<8x1xf32> to vector<8x128xf32>
    %25 = arith.subf %21, %24 : vector<8x128xf32>
    %26 = math.exp %25 : vector<8x128xf32>
    %cst_18 = arith.constant dense<0.000000e+00> : vector<8xf32>
    %27 = vector.multi_reduction <add>, %26, %cst_18 [1] : vector<8x128xf32> to vector<8xf32>
    %28 = vector.shape_cast %27 : vector<8xf32> to vector<8x1xf32>
    %29 = vector.broadcast %28 : vector<8x1xf32> to vector<8x128xf32>
    %30 = arith.divf %26, %29 : vector<8x128xf32>
    %c0_19 = arith.constant 0 : index
    %c0_20 = arith.constant 0 : index
    %31 = vector.load %arg8[%c0_19, %c0_20] : memref<8x128xf32, #tpu.memory_space<vmem>>, vector<8x128xf32>
    tpu.vector_store %arg8[%c0_19, %c0_20], %30 {strides = array<i32>} : memref<8x128xf32, #tpu.memory_space<vmem>>, vector<8x128xf32>,
    return
  }
  func.func @transform_0(%arg0: i32) -> (i32, i32) {
    %c0_i32 = arith.constant 0 : i32
    %c0_i32_0 = arith.constant 0 : i32
    return %arg0, %c0_i32 : i32, i32
  }
  func.func @transform_1(%arg0: i32) -> (i32, i32) {
    %c0_i32 = arith.constant 0 : i32
    %c0_i32_0 = arith.constant 0 : i32
    %c0_i32_1 = arith.constant 0 : i32
    return %c0_i32, %c0_i32_0 : i32, i32
  }
  func.func @transform_2(%arg0: i32) -> (i32, i32) {
    %c0_i32 = arith.constant 0 : i32
    %c0_i32_0 = arith.constant 0 : i32
    %c0_i32_1 = arith.constant 0 : i32
    return %c0_i32, %c0_i32_0 : i32, i32
  }
  func.func @transform_3(%arg0: i32) -> (i32, i32) {
    %c0_i32 = arith.constant 0 : i32
    %c0_i32_0 = arith.constant 0 : i32
    %c0_i32_1 = arith.constant 0 : i32
    return %c0_i32, %c0_i32_0 : i32, i32
  }
  func.func @transform_4(%arg0: i32) -> (i32, i32) {
    %c0_i32 = arith.constant 0 : i32
    %c0_i32_0 = arith.constant 0 : i32
    %c0_i32_1 = arith.constant 0 : i32
    return %c0_i32, %c0_i32_0 : i32, i32
  }
  func.func @transform_5(%arg0: i32) -> (i32, i32) {
    %c0_i32 = arith.constant 0 : i32
    %c0_i32_0 = arith.constant 0 : i32
    %c0_i32_1 = arith.constant 0 : i32
    return %c0_i32, %c0_i32_0 : i32, i32
  }
  func.func @transform_6(%arg0: i32) -> (i32, i32) {
    %c0_i32 = arith.constant 0 : i32
    %c0_i32_0 = arith.constant 0 : i32
    %c0_i32_1 = arith.constant 0 : i32
    return %c0_i32, %c0_i32_0 : i32, i32
  }
  func.func @transform_7(%arg0: i32) -> (i32, i32) {
    %c0_i32 = arith.constant 0 : i32
    %c0_i32_0 = arith.constant 0 : i32
    return %arg0, %c0_i32 : i32, i32
  }
}

</mosaic_0001>

<bundles_post_ra>
// kernel: simple_mlp_forward.1
= control target key start
LH: loop header
LB: loop body
LE: loop exit
PB: predicated region body
PF: predicated region fallthrough
CT: control target
= control target key end

     0   :  { %12 = vsyncpa [#allocation3], 0  ;;  %s596_s0 = inlined_call_operand.vmem [shape: bf16[8,32], index: 0, kind: input, shape index: {}]   ;;  %s597_s1 = inlined_call_operand.hbm [shape: bf16[32,128], index: 1, kind: input, shape index: {}]   ;;  %s598_s2 = inlined_call_operand.vmem [shape: f32[1,128], index: 2, kind: input, shape index: {}]   ;;  %s599_s3 = inlined_call_operand.hbm [shape: bf16[128,128], index: 3, kind: input, shape index: {}]   ;;  %s600_s4 = inlined_call_operand.vmem [shape: f32[1,128], index: 4, kind: input, shape index: {}]   ;;  %s601_s5 = inlined_call_operand.hbm [shape: bf16[128,128], index: 5, kind: input, shape index: {}]   ;;  %s602_s6 = inlined_call_operand.vmem [shape: f32[1,128], index: 6, kind: input, shape index: {}]   ;;  %s603_s7 = inlined_call_operand.hbm [shape: f32[8,128], index: 7, kind: output, shape index: {}]  }
   0x1   :  { %13 = vsyncpa [#allocation6], 0 }
   0x2   :  { %14 = vsyncpa [#allocation4], 0  ;;  %s36_s26 = sshll.u32 %s599_s3, 4  ;;  %s526_s27 = smov [#allocation5]   ;;  %s37_s26 = int_to_ptr.hbm [resolvable:$true] %s36_s26 }
   0x3   :  { %s38_s28 = sshll.u32 %s526_s27, 4  ;;  %s21_s8 = sshll.u32 %s597_s1, 4  ;;  %s39_s28 = int_to_ptr.vmem [resolvable:$true] %s38_s28  ;;  %s22_s8 = int_to_ptr.hbm [resolvable:$true] %s21_s8 }
   0x4   :  { %s527_s9 = smov 64   ;;  %s528_s10 = smov 4  }
   0x5   :  { %44 = dma.hbm_to_vmem [thread:$0]  %s37_s26, 1024, %s39_s28, [#allocation6], %s527_s9, %s527_s9, %s528_s10  }
   0x6   :  { %s529_s11 = smov [#allocation2]   ;;  %s51_s15 = sshll.u32 %s601_s5, 4  ;;  %s52_s15 = int_to_ptr.hbm [resolvable:$true] %s51_s15 }
   0x7   :  { %s23_s12 = sshll.u32 %s529_s11, 4  ;;  %s530_s3 = smov [#allocation7]   ;;  %s24_s12 = int_to_ptr.vmem [resolvable:$true] %s23_s12 }
   0x8   :  { %29 = dma.hbm_to_vmem [thread:$0]  %s22_s8, 256, %s24_s12, [#allocation3], %s527_s9, %s527_s9, %s528_s10  }
   0x9   :  { %s53_s16 = sshll.u32 %s530_s3, 4  ;;  %s54_s16 = int_to_ptr.vmem [resolvable:$true] %s53_s16 }
   0xa   :  { %59 = dma.hbm_to_vmem [thread:$0]  %s52_s15, 1024, %s54_s16, [#allocation6], %s527_s9, %s527_s9, %s528_s10  }
   0xb   :  { %520 = dma.done.wait [#allocation3], 256  }
   0xc   :  { %521 = vsyncadd [#allocation3], 4294967040 }
   0xd   :  { %522 = dma.done.wait [#allocation6], 2048  }
   0xe   :  { %523 = vsyncadd [#allocation6], 4294965248  ;;  %v394_v0 = vld [vmem:[#allocation2 + $0x8] sm:$0xff]  ;;  %v393_v2 = vld [vmem:[#allocation2] sm:$0xff]  ;;  %vm96_vm0 = vcmask 261120   ;;  %s309_s23 = sshll.u32 %s603_s7, 4  ;;  %s310_s23 = int_to_ptr.hbm [resolvable:$true] %s309_s23 }
   0xf   :  { %v402_v1 = vld [vmem:[#allocation5 + $0x38] sm:$0xff]  ;;  %106 = vmatpush.bf16.msra.mxu0 %v394_v0  ;;  %v401_v3 = vld [vmem:[#allocation5 + $0x30] sm:$0xff]  ;;  %v400_v5 = vld [vmem:[#allocation5 + $0x28] sm:$0xff] }
  0x10   :  { %183 = vmatpush.bf16.msra.mxu1 %v402_v1  ;;  %v75_v4 = vld [vmem:[%s596_s0] sm:$0xf]  ;;  %v399_v6 = vld [vmem:[#allocation5 + $0x20] sm:$0xff]  ;;  %v398_v7 = vld [vmem:[#allocation5 + $0x18] sm:$0xff] }
  0x11   :  { %v397_v8 = vld [vmem:[#allocation5 + $0x10] sm:$0xff]  ;;  %v396_v9 = vld [vmem:[#allocation5 + $0x8] sm:$0xff]  ;;  %v395_v10 = vld [vmem:[#allocation5] sm:$0xff] }
  0x12   :  { %v410_v11 = vld [vmem:[#allocation7 + $0x38] sm:$0xff]  ;;  %v409_v12 = vld [vmem:[#allocation7 + $0x30] sm:$0xff]  ;;  %v408_v13 = vld [vmem:[#allocation7 + $0x28] sm:$0xff] }
  0x13   :  { %107 = vmatpush.bf16.msra.mxu0 %v393_v2  ;;  %266 = vmatpush.bf16.msra.mxu2 %v410_v11  ;;  %v407_v14 = vld [vmem:[#allocation7 + $0x20] sm:$0xff]  ;;  %v406_v15 = vld [vmem:[#allocation7 + $0x18] sm:$0xff]  ;;  %v405_v16 = vld [vmem:[#allocation7 + $0x10] sm:$0xff] }
  0x14   :  { %184 = vmatpush.bf16.msra.mxu1 %v401_v3  ;;  %v417_v17 = vld [vmem:[%s598_s2] ss:$0 sm:$0xff]  ;;  %v404_v23 = vld [vmem:[#allocation7 + $0x8] sm:$0xff]  ;;  %v403_v24 = vld [vmem:[#allocation7] sm:$0xff] }
  0x15   :  { %v418_v25 = vld [vmem:[%s600_s4] ss:$0 sm:$0xff]  ;;  %s531_s4 = smov [#allocation8]  }
  0x16   :  { %328 = vmatmul.msk.bf16.vlgmr.msra.gmra.mxu0 %vm96_vm0, %v75_v4  ;;  %v419_v31 = vld [vmem:[%s602_s6] ss:$0 sm:$0xff]  ;;  %s307_s6 = sshll.u32 %s531_s4, 4  ;;  %s308_s6 = int_to_ptr.vmem [resolvable:$true] %s307_s6 }
  0x17   :  { %267 = vmatpush.bf16.msra.mxu2 %v409_v12 }
  0x18   :  { %185 = vmatpush.bf16.msra.mxu1 %v400_v5 }
  0x1b   :  { %268 = vmatpush.bf16.msra.mxu2 %v408_v13 }
  0x1c   :  { %186 = vmatpush.bf16.msra.mxu1 %v399_v6 }
  0x1f   :  { %269 = vmatpush.bf16.msra.mxu2 %v407_v14 }
  0x20   :  { %187 = vmatpush.bf16.msra.mxu1 %v398_v7 }
  0x23   :  { %270 = vmatpush.bf16.msra.mxu2 %v406_v15 }
  0x24   :  { %188 = vmatpush.bf16.msra.mxu1 %v397_v8 }
  0x27   :  { %271 = vmatpush.bf16.msra.mxu2 %v405_v16 }
  0x28   :  { %189 = vmatpush.bf16.msra.mxu1 %v396_v9 }
  0x2b   :  { %272 = vmatpush.bf16.msra.mxu2 %v404_v23 }
  0x2c   :  { %190 = vmatpush.bf16.msra.mxu1 %v395_v10 }
  0x2f   :  { %273 = vmatpush.bf16.msra.mxu2 %v403_v24 }
  0x93   :  { %v109_v18 = vpop.f32.mrf.mxu0 }
  0x94   :  { %v110_v19 = vadd.f32 %v417_v17, %v109_v18 }
  0x96   :  { %v113_v20 = vmax.f32 %v110_v19, 0.0 }
  0x98   :  { %v114_v21 = vpack.c.bf16 %v113_v20, %v113_v20 }
  0x9a   :  { %191 = vmatmul.bf16.vlgmr.msra.gmra.mxu1 %v114_v21 }
  0x9b   :  { %v111_v22 = vpop.f32.mrf.mxu0 }
 0x117   :  { %v192_v26 = vpop.f32.mrf.mxu1 }
 0x118   :  { %v193_v27 = vadd.f32 %v418_v25, %v192_v26 }
 0x11a   :  { %v196_v28 = vmax.f32 %v193_v27, 0.0 }
 0x11c   :  { %v197_v29 = vpack.c.bf16 %v196_v28, %v196_v28 }
 0x11e   :  { %274 = vmatmul.bf16.vlgmr.msra.gmra.mxu2 %v197_v29 }
 0x11f   :  { %v194_v30 = vpop.f32.mrf.mxu1 }
 0x1a1   :  { %v275_v32 = vpop.f32.mrf.mxu2 }
 0x1a2   :  { %v276_v33 = vadd.f32 %v419_v31, %v275_v32 }
 0x1a4   :  { %279 = vmax.xlane.f32.xlu0 %v276_v33 }
 0x1a9   :  { %v277_v34 = vpop.f32.mrf.mxu2 }
 0x217   :  { %v280_v35 = vpop.xlane.xlu0 %279 }
 0x218   :  { %v281_v36 = vsub.f32 %v276_v33, %v280_v35 }
 0x21a   :  { %v282_v37 = vmul.f32 1.442695, %v281_v36 }
 0x21c   :  { %420 = vpow2.f32 %v282_v37 }
 0x222   :  { %v421_v38 = vpop.eup %420 }
 0x223   :  { %284 = vadd.xlane.f32.xlu0 %v421_v38 }
 0x296   :  { %v285_v39 = vpop.xlane.xlu0 %284 }
 0x297   :  { %422 = vrcp.f32 %v285_v39  ;;  %v297_v43 = vand.u32 2147483648, %v285_v39  ;;  %v295_v45 = vand.u32 2147483647, %v285_v39  ;;  %vm291_vm2 = vweird.f32 %v285_v39 }
 0x299   :  { %v298_v47 = vor.u32 1.1754944e-38, %v297_v43  ;;  %vm296_vm4 = vcmp.eq.f32.partialorder %v295_v45, 8.507059e+37 }
 0x29d   :  { %v423_v40 = vpop.eup %422 }
 0x29e   :  { %v287_v41 = vmul.f32 %v423_v40, %v285_v39  ;;  %vm292_vm1 = vweird.f32 %v423_v40 }
 0x29f   :  { %vm293_vm3 = vmor %vm291_vm2, %vm292_vm1 }
 0x2a0   :  { %v288_v42 = vsub.f32 1.0, %v287_v41 }
 0x2a2   :  { %v289_v44 = vmul.f32 %v423_v40, %v288_v42 }
 0x2a4   :  { %v290_v46 = vadd.f32 %v423_v40, %v289_v44 }
 0x2a6   :  { %v294_v48 = vsel %vm293_vm3, %v423_v40, %v290_v46 }
 0x2a7   :  { %v299_v49 = vsel %vm296_vm4, %v298_v47, %v294_v48 }
 0x2a8   :  { %v300_v50 = vmul.f32 %v421_v38, %v299_v49 }
 0x2aa   :  { %301 = vst [vmem:[#allocation8] sm:$0xff] %v300_v50 }
 0x2ab   :  { %312 = dma.vmem_to_hbm [thread:$0]  %s308_s6, 128, %s310_s23, [#allocation4]  }
 0x2ac   :  { %524 = dma.done.wait [#allocation4], 128  }
 0x2ad   :  { %525 = vsyncadd [#allocation4], 4294967168 }
 0x2ae   :  { %317 = vsyncpa [#allocation3], 1 }
 0x2af   :  { %318 = vsyncpa [#allocation6], 1 }
 0x2b0   :  { %319 = vsyncpa [#allocation4], 1 }

</bundles_post_ra>
